<compile_context>
chip_gen: v6e
topology: v6e:2x2x1
jax: 0.10.0
libtpu: 0.0.40
codegen_flags: <defaults>
</compile_context>

<pallas_src>
import functools

import jax
import jax.numpy as jnp
from jax.experimental import pallas as pl
from jax.experimental.pallas import tpu as pltpu


def _cov_act_s1_kernel(x_ref, w_ref, o_ref, a_ref, *, tap_offsets, span):
    """Implicit-GEMM conv (stride 1) + fused SiLU; all images in one step.

    x_ref : (N, C1, FLAT)     zero-padded images, spatial dims flattened
    w_ref : (C2, K*K*C1)      weights, rows (kh, kw, c1)-major
    o_ref : (N, C2, span)     gapped output slab (span = Ho*Wp); the wrapper
                              strips junk columns with one reshape+slice
    a_ref : (K*K*C1, N*span)  VMEM scratch: stacked tap strips (the im2col
                              matrix only exists in VMEM -> ~1x HBM traffic)
    """
    n_imgs, c1, _ = x_ref.shape

    # Stack the k*k tap strips.  Each source slice is a dense contiguous lane
    # window of the padded image; each destination is a contiguous (C1, span)
    # block of the contraction matrix.
    for n in range(n_imgs):
        for t, off in enumerate(tap_offsets):
            a_ref[t * c1:(t + 1) * c1, n * span:(n + 1) * span] = (
                x_ref[n, :, off:off + span])

    # One GEMM over the fused contraction dim k*k*C1 (MXU accumulates
    # internally; replaces k*k tiny K=C1 matmuls plus a VALU add chain).
    acc = jnp.dot(w_ref[...], a_ref[...], preferred_element_type=jnp.float32)

    # Fused SiLU in f32 (sigmoid on the EUP).  Junk columns computed, never stored.
    acc = acc * jax.nn.sigmoid(acc)
    out = acc.astype(o_ref.dtype)

    # Dense per-image stores of the full gapped slab (no per-row masked
    # 16-lane stores).
    for n in range(n_imgs):
        o_ref[n, :, :] = out[:, n * span:(n + 1) * span]


def _gemm_silu_kernel(a_ref, w_ref, o_ref):
    """Fused (C2, K*K*C1) @ (K*K*C1, cols) GEMM + SiLU (stride > 1 path)."""
    acc = jnp.dot(w_ref[...], a_ref[...], preferred_element_type=jnp.float32)
    acc = acc * jax.nn.sigmoid(acc)
    o_ref[...] = acc.astype(o_ref.dtype)


def _vmem_limit(bytes_needed):
    # Generous: 4x the live blocks (covers double-buffering + compiler
    # scratch), floor 8 MiB, cap 64 MiB (v7x-safe).
    return int(min(max(4 * bytes_needed + (2 << 20), 8 << 20), 64 << 20))


@functools.partial(jax.jit, static_argnames=("k", "s", "p"))
def cov_act_forward(x_nchw, weight_oihw, *, k, s, p):
    """Equivalent of Cov_Act.forward (Conv2d(bias=False) + SiLU).

    x_nchw:      (N, C1, H, W)   PyTorch NCHW
    weight_oihw: (C2, C1, k, k)  PyTorch OIHW
    returns:     (N, C2, Ho, Wo)
    """
    N, C1, H, W = x_nchw.shape
    C2 = weight_oihw.shape[0]
    Hp, Wp = H + 2 * p, W + 2 * p
    Ho = (Hp - k) // s + 1
    Wo = (Wp - k) // s + 1
    KKC1 = k * k * C1
    itemsize = jnp.dtype(x_nchw.dtype).itemsize

    # Weights: OIHW -> (C2, k*k*C1), rows (kh, kw, c1)-major so every tap is a
    # contiguous C1-row block of the contraction dim.  One (C2, KKC1) tile
    # instead of k*k lane-padded (C2, C1) tiles.
    w2 = jnp.transpose(weight_oihw, (0, 2, 3, 1)).reshape(C2, KKC1)

    if s == 1:
        # ---- implicit-GEMM path: padded image goes to VMEM exactly once ----
        span = Ho * Wp                                   # gapped row length
        # A few extra zero rows keep the last tap's strip slice in bounds.
        needed = (k - 1) * Wp + (k - 1) + span
        extra_rows = max(0, -(-(needed - Hp * Wp) // Wp))
        x_pad = jnp.pad(x_nchw, ((0, 0), (0, 0), (p, p + extra_rows), (p, p)))
        flat = (Hp + extra_rows) * Wp
        x_flat = x_pad.reshape(N, C1, flat)              # free contiguous reshape

        tap_offsets = tuple(kh * Wp + kw for kh in range(k) for kw in range(k))
        kernel = functools.partial(
            _cov_act_s1_kernel, tap_offsets=tap_offsets, span=span)

        block_bytes = (N * C1 * flat + C2 * KKC1 + N * C2 * span) * itemsize
        scratch_bytes = KKC1 * N * span * itemsize
        cost = pl.CostEstimate(
            flops=2 * C2 * KKC1 * N * span,
            transcendentals=N * C2 * span,
            bytes_accessed=block_bytes,
        )

        out_gapped = pl.pallas_call(
            kernel,
            out_shape=jax.ShapeDtypeStruct((N, C2, span), x_nchw.dtype),
            grid=(1,),
            in_specs=[
                pl.BlockSpec((N, C1, flat), lambda i: (0, 0, 0)),
                pl.BlockSpec((C2, KKC1), lambda i: (0, 0)),
            ],
            out_specs=pl.BlockSpec((N, C2, span), lambda i: (0, 0, 0)),
            scratch_shapes=[pltpu.VMEM((KKC1, N * span), x_nchw.dtype)],
            compiler_params=pltpu.CompilerParams(
                dimension_semantics=("arbitrary",),
                vmem_limit_bytes=_vmem_limit(block_bytes + scratch_bytes),
            ),
            cost_estimate=cost,
        )(x_flat, w2)

        # De-gap wrapper-side: one contiguous reshape + one dense slice that
        # drops the (Wp - Wo) junk columns per output row.
        return out_gapped.reshape(N, C2, Ho, Wp)[..., :Wo]

    # ---- stride > 1 path: tap gather with dense strided slices in the -------
    # ---- wrapper (no lane-strided in-kernel loads, no junk columns) ---------
    x_pad = jnp.pad(x_nchw, ((0, 0), (0, 0), (p, p), (p, p)))
    taps = []
    for kh in range(k):
        for kw in range(k):
            taps.append(jax.lax.slice(
                x_pad,
                (0, 0, kh, kw),
                (N, C1, kh + s * (Ho - 1) + 1, kw + s * (Wo - 1) + 1),
                (1, 1, s, s)))                           # (N, C1, Ho, Wo)
    a = jnp.stack(taps, axis=1)                          # (N, kk, C1, Ho, Wo)
    a = jnp.transpose(a, (1, 2, 0, 3, 4)).reshape(KKC1, N * Ho * Wo)

    cols = N * Ho * Wo
    block_bytes = (KKC1 * cols + C2 * KKC1 + C2 * cols) * itemsize
    cost = pl.CostEstimate(
        flops=2 * C2 * KKC1 * cols,
        transcendentals=C2 * cols,
        bytes_accessed=block_bytes,
    )

    out2d = pl.pallas_call(
        _gemm_silu_kernel,
        out_shape=jax.ShapeDtypeStruct((C2, cols), x_nchw.dtype),
        grid=(1,),
        in_specs=[
            pl.BlockSpec((KKC1, cols), lambda i: (0, 0)),
            pl.BlockSpec((C2, KKC1), lambda i: (0, 0)),
        ],
        out_specs=pl.BlockSpec((C2, cols), lambda i: (0, 0)),
        compiler_params=pltpu.CompilerParams(
            dimension_semantics=("arbitrary",),
            vmem_limit_bytes=_vmem_limit(block_bytes),
        ),
        cost_estimate=cost,
    )(a, w2)
    return jnp.transpose(out2d.reshape(C2, N, Ho, Wo), (1, 0, 2, 3))


if __name__ == "__main__":
    # Shapes consistent with the module: Cov_Act(c1=4, c2=8, k=3, s=1, p=1)
    N, C1, H, W = 2, 4, 16, 16
    C2, K, S, P = 8, 3, 1, 1

    key = jax.random.PRNGKey(0)
    kx, kw = jax.random.split(key)
    x = jax.random.normal(kx, (N, C1, H, W), dtype=jnp.float32)
    weight = 0.1 * jax.random.normal(kw, (C2, C1, K, K), dtype=jnp.float32)

    def ref_conv_silu(xv, wv, stride, pad):
        y = jax.lax.conv_general_dilated(
            xv, wv, window_strides=(stride, stride),
            padding=((pad, pad), (pad, pad)),
            dimension_numbers=("NCHW", "OIHW", "NCHW"))
        return y * jax.nn.sigmoid(y)

    # Stride-1 path (implicit GEMM kernel).
    out = cov_act_forward(x, weight, k=K, s=S, p=P)
    jax.block_until_ready(out)
    ref = ref_conv_silu(x, weight, S, P)
    assert out.shape == ref.shape
    assert jnp.max(jnp.abs(out - ref)) < 1e-4

    # Stride-2 path (wrapper-side tap gather + fused GEMM kernel).
    out2 = cov_act_forward(x, weight, k=K, s=2, p=P)
    jax.block_until_ready(out2)
    ref2 = ref_conv_silu(x, weight, 2, P)
    assert out2.shape == ref2.shape
    assert jnp.max(jnp.abs(out2 - ref2)) < 1e-4

    print("KERNEL_OK")
</pallas_src>

<mosaic_0001>
module attributes {stable_mosaic.version = 11 : i64} {
  func.func @_cov_act_s1_kernel(%arg0: i32, %arg1: memref<2x4x342xf32, #tpu.memory_space<vmem>>, %arg2: memref<8x36xf32, #tpu.memory_space<vmem>>, %arg3: memref<2x8x288xf32, #tpu.memory_space<vmem>>, %arg4: memref<36x576xf32, #tpu.memory_space<vmem>>) attributes {dimension_semantics = [#tpu.dimension_semantics<arbitrary>], iteration_bounds = array<i64: 1>, scalar_prefetch = 0 : i64, scratch_operands = 1 : i64, tpu.core_type = #tpu.core_type<tc>, window_params = [{pipeline_mode = #tpu.pipeline_mode<synchronous>, transform_indices = @transform_0, window_bounds = array<i64: 2, 4, 342>}, {pipeline_mode = #tpu.pipeline_mode<synchronous>, transform_indices = @transform_1, window_bounds = array<i64: 8, 36>}, {pipeline_mode = #tpu.pipeline_mode<synchronous>, transform_indices = @transform_2, window_bounds = array<i64: 2, 8, 288>}]} {
    %c0 = arith.constant 0 : index
    %c0_0 = arith.constant 0 : index
    %c0_1 = arith.constant 0 : index
    %0 = vector.load %arg1[%c0, %c0_0, %c0_1] : memref<2x4x342xf32, #tpu.memory_space<vmem>>, vector<1x4x288xf32>
    %1 = vector.shape_cast %0 : vector<1x4x288xf32> to vector<4x288xf32>
    %c0_2 = arith.constant 0 : index
    %c0_3 = arith.constant 0 : index
    %2 = vector.load %arg4[%c0_2, %c0_3] : memref<36x576xf32, #tpu.memory_space<vmem>>, vector<4x288xf32>
    tpu.vector_store %arg4[%c0_2, %c0_3], %1 {strides = array<i32>} : memref<36x576xf32, #tpu.memory_space<vmem>>, vector<4x288xf32>,
    %c0_4 = arith.constant 0 : index
    %c0_5 = arith.constant 0 : index
    %c1 = arith.constant 1 : index
    %3 = vector.load %arg1[%c0_4, %c0_5, %c1] : memref<2x4x342xf32, #tpu.memory_space<vmem>>, vector<1x4x288xf32>
    %4 = vector.shape_cast %3 : vector<1x4x288xf32> to vector<4x288xf32>
    %c4 = arith.constant 4 : index
    %c0_6 = arith.constant 0 : index
    %5 = vector.load %arg4[%c4, %c0_6] : memref<36x576xf32, #tpu.memory_space<vmem>>, vector<4x288xf32>
    tpu.vector_store %arg4[%c4, %c0_6], %4 {strides = array<i32>} : memref<36x576xf32, #tpu.memory_space<vmem>>, vector<4x288xf32>,
    %c0_7 = arith.constant 0 : index
    %c0_8 = arith.constant 0 : index
    %c2 = arith.constant 2 : index
    %6 = vector.load %arg1[%c0_7, %c0_8, %c2] : memref<2x4x342xf32, #tpu.memory_space<vmem>>, vector<1x4x288xf32>
    %7 = vector.shape_cast %6 : vector<1x4x288xf32> to vector<4x288xf32>
    %c8 = arith.constant 8 : index
    %c0_9 = arith.constant 0 : index
    %8 = vector.load %arg4[%c8, %c0_9] : memref<36x576xf32, #tpu.memory_space<vmem>>, vector<4x288xf32>
    tpu.vector_store %arg4[%c8, %c0_9], %7 {strides = array<i32>} : memref<36x576xf32, #tpu.memory_space<vmem>>, vector<4x288xf32>,
    %c0_10 = arith.constant 0 : index
    %c0_11 = arith.constant 0 : index
    %c18 = arith.constant 18 : index
    %9 = vector.load %arg1[%c0_10, %c0_11, %c18] : memref<2x4x342xf32, #tpu.memory_space<vmem>>, vector<1x4x288xf32>
    %10 = vector.shape_cast %9 : vector<1x4x288xf32> to vector<4x288xf32>
    %c12 = arith.constant 12 : index
    %c0_12 = arith.constant 0 : index
    %11 = vector.load %arg4[%c12, %c0_12] : memref<36x576xf32, #tpu.memory_space<vmem>>, vector<4x288xf32>
    tpu.vector_store %arg4[%c12, %c0_12], %10 {strides = array<i32>} : memref<36x576xf32, #tpu.memory_space<vmem>>, vector<4x288xf32>,
    %c0_13 = arith.constant 0 : index
    %c0_14 = arith.constant 0 : index
    %c19 = arith.constant 19 : index
    %12 = vector.load %arg1[%c0_13, %c0_14, %c19] : memref<2x4x342xf32, #tpu.memory_space<vmem>>, vector<1x4x288xf32>
    %13 = vector.shape_cast %12 : vector<1x4x288xf32> to vector<4x288xf32>
    %c16 = arith.constant 16 : index
    %c0_15 = arith.constant 0 : index
    %14 = vector.load %arg4[%c16, %c0_15] : memref<36x576xf32, #tpu.memory_space<vmem>>, vector<4x288xf32>
    tpu.vector_store %arg4[%c16, %c0_15], %13 {strides = array<i32>} : memref<36x576xf32, #tpu.memory_space<vmem>>, vector<4x288xf32>,
    %c0_16 = arith.constant 0 : index
    %c0_17 = arith.constant 0 : index
    %c20 = arith.constant 20 : index
    %15 = vector.load %arg1[%c0_16, %c0_17, %c20] : memref<2x4x342xf32, #tpu.memory_space<vmem>>, vector<1x4x288xf32>
    %16 = vector.shape_cast %15 : vector<1x4x288xf32> to vector<4x288xf32>
    %c20_18 = arith.constant 20 : index
    %c0_19 = arith.constant 0 : index
    %17 = vector.load %arg4[%c20_18, %c0_19] : memref<36x576xf32, #tpu.memory_space<vmem>>, vector<4x288xf32>
    tpu.vector_store %arg4[%c20_18, %c0_19], %16 {strides = array<i32>} : memref<36x576xf32, #tpu.memory_space<vmem>>, vector<4x288xf32>,
    %c0_20 = arith.constant 0 : index
    %c0_21 = arith.constant 0 : index
    %c36 = arith.constant 36 : index
    %18 = vector.load %arg1[%c0_20, %c0_21, %c36] : memref<2x4x342xf32, #tpu.memory_space<vmem>>, vector<1x4x288xf32>
    %19 = vector.shape_cast %18 : vector<1x4x288xf32> to vector<4x288xf32>
    %c24 = arith.constant 24 : index
    %c0_22 = arith.constant 0 : index
    %20 = vector.load %arg4[%c24, %c0_22] : memref<36x576xf32, #tpu.memory_space<vmem>>, vector<4x288xf32>
    tpu.vector_store %arg4[%c24, %c0_22], %19 {strides = array<i32>} : memref<36x576xf32, #tpu.memory_space<vmem>>, vector<4x288xf32>,
    %c0_23 = arith.constant 0 : index
    %c0_24 = arith.constant 0 : index
    %c37 = arith.constant 37 : index
    %21 = vector.load %arg1[%c0_23, %c0_24, %c37] : memref<2x4x342xf32, #tpu.memory_space<vmem>>, vector<1x4x288xf32>
    %22 = vector.shape_cast %21 : vector<1x4x288xf32> to vector<4x288xf32>
    %c28 = arith.constant 28 : index
    %c0_25 = arith.constant 0 : index
    %23 = vector.load %arg4[%c28, %c0_25] : memref<36x576xf32, #tpu.memory_space<vmem>>, vector<4x288xf32>
    tpu.vector_store %arg4[%c28, %c0_25], %22 {strides = array<i32>} : memref<36x576xf32, #tpu.memory_space<vmem>>, vector<4x288xf32>,
    %c0_26 = arith.constant 0 : index
    %c0_27 = arith.constant 0 : index
    %c38 = arith.constant 38 : index
    %24 = vector.load %arg1[%c0_26, %c0_27, %c38] : memref<2x4x342xf32, #tpu.memory_space<vmem>>, vector<1x4x288xf32>
    %25 = vector.shape_cast %24 : vector<1x4x288xf32> to vector<4x288xf32>
    %c32 = arith.constant 32 : index
    %c0_28 = arith.constant 0 : index
    %26 = vector.load %arg4[%c32, %c0_28] : memref<36x576xf32, #tpu.memory_space<vmem>>, vector<4x288xf32>
    tpu.vector_store %arg4[%c32, %c0_28], %25 {strides = array<i32>} : memref<36x576xf32, #tpu.memory_space<vmem>>, vector<4x288xf32>,
    %c1_29 = arith.constant 1 : index
    %c0_30 = arith.constant 0 : index
    %c0_31 = arith.constant 0 : index
    %27 = vector.load %arg1[%c1_29, %c0_30, %c0_31] : memref<2x4x342xf32, #tpu.memory_space<vmem>>, vector<1x4x288xf32>
    %28 = vector.shape_cast %27 : vector<1x4x288xf32> to vector<4x288xf32>
    %c0_32 = arith.constant 0 : index
    %c288 = arith.constant 288 : index
    %29 = vector.load %arg4[%c0_32, %c288] : memref<36x576xf32, #tpu.memory_space<vmem>>, vector<4x288xf32>
    tpu.vector_store %arg4[%c0_32, %c288], %28 {strides = array<i32>} : memref<36x576xf32, #tpu.memory_space<vmem>>, vector<4x288xf32>,
    %c1_33 = arith.constant 1 : index
    %c0_34 = arith.constant 0 : index
    %c1_35 = arith.constant 1 : index
    %30 = vector.load %arg1[%c1_33, %c0_34, %c1_35] : memref<2x4x342xf32, #tpu.memory_space<vmem>>, vector<1x4x288xf32>
    %31 = vector.shape_cast %30 : vector<1x4x288xf32> to vector<4x288xf32>
    %c4_36 = arith.constant 4 : index
    %c288_37 = arith.constant 288 : index
    %32 = vector.load %arg4[%c4_36, %c288_37] : memref<36x576xf32, #tpu.memory_space<vmem>>, vector<4x288xf32>
    tpu.vector_store %arg4[%c4_36, %c288_37], %31 {strides = array<i32>} : memref<36x576xf32, #tpu.memory_space<vmem>>, vector<4x288xf32>,
    %c1_38 = arith.constant 1 : index
    %c0_39 = arith.constant 0 : index
    %c2_40 = arith.constant 2 : index
    %33 = vector.load %arg1[%c1_38, %c0_39, %c2_40] : memref<2x4x342xf32, #tpu.memory_space<vmem>>, vector<1x4x288xf32>
    %34 = vector.shape_cast %33 : vector<1x4x288xf32> to vector<4x288xf32>
    %c8_41 = arith.constant 8 : index
    %c288_42 = arith.constant 288 : index
    %35 = vector.load %arg4[%c8_41, %c288_42] : memref<36x576xf32, #tpu.memory_space<vmem>>, vector<4x288xf32>
    tpu.vector_store %arg4[%c8_41, %c288_42], %34 {strides = array<i32>} : memref<36x576xf32, #tpu.memory_space<vmem>>, vector<4x288xf32>,
    %c1_43 = arith.constant 1 : index
    %c0_44 = arith.constant 0 : index
    %c18_45 = arith.constant 18 : index
    %36 = vector.load %arg1[%c1_43, %c0_44, %c18_45] : memref<2x4x342xf32, #tpu.memory_space<vmem>>, vector<1x4x288xf32>
    %37 = vector.shape_cast %36 : vector<1x4x288xf32> to vector<4x288xf32>
    %c12_46 = arith.constant 12 : index
    %c288_47 = arith.constant 288 : index
    %38 = vector.load %arg4[%c12_46, %c288_47] : memref<36x576xf32, #tpu.memory_space<vmem>>, vector<4x288xf32>
    tpu.vector_store %arg4[%c12_46, %c288_47], %37 {strides = array<i32>} : memref<36x576xf32, #tpu.memory_space<vmem>>, vector<4x288xf32>,
    %c1_48 = arith.constant 1 : index
    %c0_49 = arith.constant 0 : index
    %c19_50 = arith.constant 19 : index
    %39 = vector.load %arg1[%c1_48, %c0_49, %c19_50] : memref<2x4x342xf32, #tpu.memory_space<vmem>>, vector<1x4x288xf32>
    %40 = vector.shape_cast %39 : vector<1x4x288xf32> to vector<4x288xf32>
    %c16_51 = arith.constant 16 : index
    %c288_52 = arith.constant 288 : index
    %41 = vector.load %arg4[%c16_51, %c288_52] : memref<36x576xf32, #tpu.memory_space<vmem>>, vector<4x288xf32>
    tpu.vector_store %arg4[%c16_51, %c288_52], %40 {strides = array<i32>} : memref<36x576xf32, #tpu.memory_space<vmem>>, vector<4x288xf32>,
    %c1_53 = arith.constant 1 : index
    %c0_54 = arith.constant 0 : index
    %c20_55 = arith.constant 20 : index
    %42 = vector.load %arg1[%c1_53, %c0_54, %c20_55] : memref<2x4x342xf32, #tpu.memory_space<vmem>>, vector<1x4x288xf32>
    %43 = vector.shape_cast %42 : vector<1x4x288xf32> to vector<4x288xf32>
    %c20_56 = arith.constant 20 : index
    %c288_57 = arith.constant 288 : index
    %44 = vector.load %arg4[%c20_56, %c288_57] : memref<36x576xf32, #tpu.memory_space<vmem>>, vector<4x288xf32>
    tpu.vector_store %arg4[%c20_56, %c288_57], %43 {strides = array<i32>} : memref<36x576xf32, #tpu.memory_space<vmem>>, vector<4x288xf32>,
    %c1_58 = arith.constant 1 : index
    %c0_59 = arith.constant 0 : index
    %c36_60 = arith.constant 36 : index
    %45 = vector.load %arg1[%c1_58, %c0_59, %c36_60] : memref<2x4x342xf32, #tpu.memory_space<vmem>>, vector<1x4x288xf32>
    %46 = vector.shape_cast %45 : vector<1x4x288xf32> to vector<4x288xf32>
    %c24_61 = arith.constant 24 : index
    %c288_62 = arith.constant 288 : index
    %47 = vector.load %arg4[%c24_61, %c288_62] : memref<36x576xf32, #tpu.memory_space<vmem>>, vector<4x288xf32>
    tpu.vector_store %arg4[%c24_61, %c288_62], %46 {strides = array<i32>} : memref<36x576xf32, #tpu.memory_space<vmem>>, vector<4x288xf32>,
    %c1_63 = arith.constant 1 : index
    %c0_64 = arith.constant 0 : index
    %c37_65 = arith.constant 37 : index
    %48 = vector.load %arg1[%c1_63, %c0_64, %c37_65] : memref<2x4x342xf32, #tpu.memory_space<vmem>>, vector<1x4x288xf32>
    %49 = vector.shape_cast %48 : vector<1x4x288xf32> to vector<4x288xf32>
    %c28_66 = arith.constant 28 : index
    %c288_67 = arith.constant 288 : index
    %50 = vector.load %arg4[%c28_66, %c288_67] : memref<36x576xf32, #tpu.memory_space<vmem>>, vector<4x288xf32>
    tpu.vector_store %arg4[%c28_66, %c288_67], %49 {strides = array<i32>} : memref<36x576xf32, #tpu.memory_space<vmem>>, vector<4x288xf32>,
    %c1_68 = arith.constant 1 : index
    %c0_69 = arith.constant 0 : index
    %c38_70 = arith.constant 38 : index
    %51 = vector.load %arg1[%c1_68, %c0_69, %c38_70] : memref<2x4x342xf32, #tpu.memory_space<vmem>>, vector<1x4x288xf32>
    %52 = vector.shape_cast %51 : vector<1x4x288xf32> to vector<4x288xf32>
    %c32_71 = arith.constant 32 : index
    %c288_72 = arith.constant 288 : index
    %53 = vector.load %arg4[%c32_71, %c288_72] : memref<36x576xf32, #tpu.memory_space<vmem>>, vector<4x288xf32>
    tpu.vector_store %arg4[%c32_71, %c288_72], %52 {strides = array<i32>} : memref<36x576xf32, #tpu.memory_space<vmem>>, vector<4x288xf32>,
    %c0_73 = arith.constant 0 : index
    %c0_74 = arith.constant 0 : index
    %54 = vector.load %arg2[%c0_73, %c0_74] : memref<8x36xf32, #tpu.memory_space<vmem>>, vector<8x36xf32>
    %c0_75 = arith.constant 0 : index
    %c0_76 = arith.constant 0 : index
    %55 = vector.load %arg4[%c0_75, %c0_76] : memref<36x576xf32, #tpu.memory_space<vmem>>, vector<36x576xf32>
    %cst = arith.constant dense<0.000000e+00> : vector<8x576xf32>
    %56 = tpu.matmul %54, %55, %cst {dimension_numbers = #tpu.dot_dimension_numbers<[1], [0], [0], [1], [0, 0, 1, 1], [], []>} : vector<8x36xf32>, vector<36x576xf32>, vector<8x576xf32> -> vector<8x576xf32>
    %57 = arith.negf %56 : vector<8x576xf32>
    %58 = math.exp %57 : vector<8x576xf32>
    %cst_77 = arith.constant 1.000000e+00 : f32
    %59 = vector.broadcast %cst_77 : f32 to vector<8x576xf32>
    %60 = arith.addf %59, %58 : vector<8x576xf32>
    %61 = arith.divf %59, %60 : vector<8x576xf32>
    %62 = arith.mulf %56, %61 : vector<8x576xf32>
    %63 = vector.extract_strided_slice %62 {offsets = [0, 0], sizes = [8, 288], strides = [1, 1]} : vector<8x576xf32> to vector<8x288xf32>
    %c0_78 = arith.constant 0 : index
    %c0_79 = arith.constant 0 : index
    %c0_80 = arith.constant 0 : index
    %64 = vector.load %arg3[%c0_78, %c0_79, %c0_80] : memref<2x8x288xf32, #tpu.memory_space<vmem>>, vector<1x8x288xf32>
    %65 = vector.shape_cast %64 : vector<1x8x288xf32> to vector<8x288xf32>
    %66 = vector.shape_cast %63 : vector<8x288xf32> to vector<1x8x288xf32>
    tpu.vector_store %arg3[%c0_78, %c0_79, %c0_80], %66 {strides = array<i32>} : memref<2x8x288xf32, #tpu.memory_space<vmem>>, vector<1x8x288xf32>,
    %67 = vector.extract_strided_slice %62 {offsets = [0, 288], sizes = [8, 288], strides = [1, 1]} : vector<8x576xf32> to vector<8x288xf32>
    %c1_81 = arith.constant 1 : index
    %c0_82 = arith.constant 0 : index
    %c0_83 = arith.constant 0 : index
    %68 = vector.load %arg3[%c1_81, %c0_82, %c0_83] : memref<2x8x288xf32, #tpu.memory_space<vmem>>, vector<1x8x288xf32>
    %69 = vector.shape_cast %68 : vector<1x8x288xf32> to vector<8x288xf32>
    %70 = vector.shape_cast %67 : vector<8x288xf32> to vector<1x8x288xf32>
    tpu.vector_store %arg3[%c1_81, %c0_82, %c0_83], %70 {strides = array<i32>} : memref<2x8x288xf32, #tpu.memory_space<vmem>>, vector<1x8x288xf32>,
    return
  }
  func.func @transform_0(%arg0: i32) -> (i32, i32, i32) {
    %c0_i32 = arith.constant 0 : i32
    %c0_i32_0 = arith.constant 0 : i32
    %c0_i32_1 = arith.constant 0 : i32
    %c0_i32_2 = arith.constant 0 : i32
    return %c0_i32, %c0_i32_0, %c0_i32_1 : i32, i32, i32
  }
  func.func @transform_1(%arg0: i32) -> (i32, i32) {
    %c0_i32 = arith.constant 0 : i32
    %c0_i32_0 = arith.constant 0 : i32
    %c0_i32_1 = arith.constant 0 : i32
    return %c0_i32, %c0_i32_0 : i32, i32
  }
  func.func @transform_2(%arg0: i32) -> (i32, i32, i32) {
    %c0_i32 = arith.constant 0 : i32
    %c0_i32_0 = arith.constant 0 : i32
    %c0_i32_1 = arith.constant 0 : i32
    %c0_i32_2 = arith.constant 0 : i32
    return %c0_i32, %c0_i32_0, %c0_i32_1 : i32, i32, i32
  }
}

</mosaic_0001>

<bundles_post_ra>
// kernel: cov_act_forward.1
= control target key start
LH: loop header
LB: loop body
LE: loop exit
PB: predicated region body
PF: predicated region fallthrough
CT: control target
= control target key end

     0   :  { %s798_s13 = smov 90   ;;  %s799_s14 = smov 92   ;;  %v807_v14 = vmov 0.0   ;;  %vm18_vm0 = vcmask 257024   ;;  %vm176_vm1 = vcmask 736256   ;;  %vm135_vm2 = vcmask 752640   ;;  %s980_s0 = inlined_call_operand.vmem [shape: f32[2,4,342], index: 0, kind: input, shape index: {}]   ;;  %s981_s1 = inlined_call_operand.vmem [shape: f32[8,36], index: 1, kind: input, shape index: {}]   ;;  %s982_s2 = inlined_call_operand.vmem [shape: f32[2,8,288], index: 2, kind: output, shape index: {}]  }
   0x1   :  { %v166_v0 = vld [vmem:[%s980_s0 + $0x8] sm:$0xf]  ;;  %v165_v1 = vld [vmem:[%s980_s0] sm:$0xff]  ;;  %s800_s17 = smov 91   ;;  %s801_s20 = smov 109   ;;  %v709_v10 = vld [vmem:[%s980_s0 + $0xc] sm:$0xff]  ;;  %484 = vmatprep.mubr.f32.mxu0 %v807_v14  ;;  %555 = vmatprep.mubr.f32.mxu1 %v807_v14 }
   0x2   :  { %174 = vrot.lane.b32.xlu0 %v166_v0, %s798_s13  ;;  %170 = vrot.lane.b32.xlu1 %v165_v1, %s798_s13  ;;  %v169_v2 = vcombine.high %v165_v1, %v165_v1  ;;  %16 = vst [vmem:[#allocation2] sm:$0xf] %v165_v1  ;;  %v125_v3 = vld [vmem:[%s980_s0 + $0x8] sm:$0xf]  ;;  %v148_v5 = vcombine.low %v165_v1, %v165_v1  ;;  %s802_s23 = smov 108   ;;  %s803_s26 = smov 126  }
   0x3   :  { %v768_v4 = vld [vmem:[%s980_s0 + $0x8] ss:$0 sps:$4 sm:$0xff]   ;;  %s804_s29 = smov 110   ;;  %s805_s6 = smov 127   ;;  %v358_v12 = vcombine.high %v709_v10, %v709_v10  ;;  %v710_v13 = vld [vmem:[%s980_s0 + $0x14] sm:$0xf]  ;;  %v337_v17 = vcombine.low %v709_v10, %v709_v10 }
   0x4   :  { %17 = vst [vmem:[#allocation2 + $0x8] sm:$0xf] %v169_v2  ;;  %v84_v6 = vld [vmem:[%s980_s0 + $0x8] sm:$0xf]  ;;  %s806_s9 = smov 122   ;;  %s808_s12 = smov 124  }
   0x5   :  { %v769_v7 = vld [vmem:[%s980_s0 + $0x8] ss:$0 sps:$4 sm:$0xff]   ;;  %v706_v15 = vld [vmem:[%s980_s0 + $0x14] sm:$0xf]  ;;  %s809_s15 = smov 123   ;;  %s810_s18 = smov 13  }
   0x6   :  { %172 = vrot.lane.b32.xlu0 %v169_v2, %s798_s13  ;;  %131 = vrot.lane.b32.xlu1 %v169_v2, %s799_s14  ;;  %v43_v8 = vld [vmem:[%s980_s0 + $0x8] sm:$0xf]  ;;  %v774_v16 = vld [vmem:[%s980_s0 + $0x14] ss:$0 sps:$4 sm:$0xff]   ;;  %s811_s19 = smov 12   ;;  %s814_s28 = smov 32  }
   0x7   :  { %v770_v9 = vld [vmem:[%s980_s0 + $0x8] ss:$0 sps:$4 sm:$0xff]   ;;  %v702_v19 = vld [vmem:[%s980_s0 + $0x14] sm:$0xf]  ;;  %vm40_vm3 = vcmask 261124   ;;  %vm156_vm4 = vcmask 744448  }
   0x8   :  { %v771_v11 = vld [vmem:[%s980_s0 + $0x8] ss:$0 sps:$4 sm:$0xff]   ;;  %v775_v20 = vld [vmem:[%s980_s0 + $0x14] ss:$0 sps:$4 sm:$0xff]   ;;  %vm404_vm5 = vcmask 1043456   ;;  %vm94_vm6 = vcmask 891904  }
   0x9   :  { %v12_v18 = vld [vmem:[%s980_s0 + $0x8] sm:$0xf]  ;;  %v698_v21 = vld [vmem:[%s980_s0 + $0x14] sm:$0xf]  ;;  %vm115_vm7 = vcmask 883712   ;;  %vm53_vm8 = vcmask 1031168  }
   0xa   :  { %133 = vrot.lane.b32.xlu0 %v125_v3, %s799_s14  ;;  %152 = vrot.lane.b32.xlu1 %v165_v1, %s800_s17  ;;  %19 = vst.msk [vmem:[#allocation2 + $0x10] sm:$0xf] %vm18_vm0, %v12_v18  ;;  %v776_v22 = vld [vmem:[%s980_s0 + $0x14] ss:$0 sps:$4 sm:$0xff]   ;;  %vm74_vm9 = vcmask 900096   ;;  %vm32_vm10 = vcmask 1039360  }
   0xb   :  { %v694_v23 = vld [vmem:[%s980_s0 + $0x14] sm:$0xf]  ;;  %vm206_vm11 = vcmask 519168   ;;  %vm365_vm12 = vcmask 998400   ;;  %vm203_vm13 = vcmask 1043712   ;;  %vm324_vm14 = vcmask 1014784  }
   0xc   :  { %v777_v24 = vld [vmem:[%s980_s0 + $0x14] ss:$0 sps:$4 sm:$0xff]   ;;  %vm400_vm15 = vcmask 293888   ;;  %s817_s16 = smov 96  }
   0xe   :  { %154 = vrot.lane.b32.xlu0 %v768_v4, %s800_s17  ;;  %129 = vrot.lane.b32.xlu1 %v165_v1, %s799_s14 }
  0x12   :  { %150 = vrot.lane.b32.xlu0 %v148_v5, %s800_s17  ;;  %90 = vrot.lane.b32.xlu1 %v169_v2, %s801_s20 }
  0x16   :  { %92 = vrot.lane.b32.xlu0 %v84_v6, %s801_s20  ;;  %111 = vrot.lane.b32.xlu1 %v165_v1, %s802_s23 }
  0x1a   :  { %113 = vrot.lane.b32.xlu0 %v769_v7, %s802_s23  ;;  %88 = vrot.lane.b32.xlu1 %v165_v1, %s801_s20  ;;  %s812_s20 = smov 30  }
  0x1e   :  { %109 = vrot.lane.b32.xlu0 %v148_v5, %s802_s23  ;;  %49 = vrot.lane.b32.xlu1 %v169_v2, %s803_s26  ;;  %s813_s23 = smov 14  }
  0x22   :  { %51 = vrot.lane.b32.xlu0 %v43_v8, %s803_s26  ;;  %70 = vrot.lane.b32.xlu1 %v165_v1, %s804_s29 }
  0x26   :  { %72 = vrot.lane.b32.xlu0 %v770_v9, %s804_s29  ;;  %47 = vrot.lane.b32.xlu1 %v165_v1, %s803_s26 }
  0x2a   :  { %68 = vrot.lane.b32.xlu0 %v148_v5, %s804_s29  ;;  %28 = vrot.lane.b32.xlu1 %v165_v1, %s805_s6  ;;  %s815_s29 = smov 31  }
  0x2e   :  { %30 = vrot.lane.b32.xlu0 %v771_v11, %s805_s6  ;;  %361 = vrot.lane.b32.xlu1 %v358_v12, %s806_s9 }
  0x32   :  { %363 = vrot.lane.b32.xlu0 %v710_v13, %s806_s9  ;;  %26 = vrot.lane.b32.xlu1 %v148_v5, %s805_s6 }
  0x36   :  { %359 = vrot.lane.b32.xlu0 %v709_v10, %s806_s9  ;;  %320 = vrot.lane.b32.xlu1 %v358_v12, %s808_s12 }
  0x3a   :  { %322 = vrot.lane.b32.xlu0 %v706_v15, %s808_s12  ;;  %341 = vrot.lane.b32.xlu1 %v709_v10, %s809_s15 }
  0x3e   :  { %343 = vrot.lane.b32.xlu0 %v774_v16, %s809_s15  ;;  %318 = vrot.lane.b32.xlu1 %v709_v10, %s808_s12 }
  0x42   :  { %339 = vrot.lane.b32.xlu0 %v337_v17, %s809_s15  ;;  %277 = vrot.lane.b32.xlu1 %v709_v10, %s810_s18 }
  0x46   :  { %279 = vrot.lane.b32.xlu0 %v358_v12, %s810_s18  ;;  %298 = vrot.lane.b32.xlu1 %v337_v17, %s811_s19 }
  0x4a   :  { %300 = vrot.lane.b32.xlu0 %v709_v10, %s811_s19  ;;  %236 = vrot.lane.b32.xlu1 %v709_v10, %s812_s20 }
  0x4e   :  { %238 = vrot.lane.b32.xlu0 %v358_v12, %s812_s20  ;;  %257 = vrot.lane.b32.xlu1 %v337_v17, %s813_s23 }
  0x52   :  { %259 = vrot.lane.b32.xlu0 %v709_v10, %s813_s23  ;;  %281 = vrot.lane.b32.xlu1 %v702_v19, %s810_s18  ;;  %v911_v19 = vld [vmem:[%s981_s1] sm:$0xff] }
  0x56   :  { %302 = vrot.lane.b32.xlu0 %v775_v20, %s811_s19  ;;  %191 = vrot.lane.b32.xlu1 %v709_v10, %s814_s28 }
  0x5a   :  { %193 = vrot.lane.b32.xlu0 %v358_v12, %s814_s28  ;;  %214 = vrot.lane.b32.xlu1 %v337_v17, %s815_s29 }
  0x5e   :  { %216 = vrot.lane.b32.xlu0 %v709_v10, %s815_s29  ;;  %240 = vrot.lane.b32.xlu1 %v698_v21, %s812_s20 }
  0x62   :  { %261 = vrot.lane.b32.xlu0 %v776_v22, %s813_s23  ;;  %195 = vrot.lane.b32.xlu1 %v694_v23, %s814_s28 }
  0x66   :  { %218 = vrot.lane.b32.xlu0 %v777_v24, %s815_s29 }
  0x74   :  { %v175_v25 = vpop.permute.xlu0 %174  ;;  %v171_v26 = vpop.permute.xlu1 %170 }
  0x75   :  { %184 = vst.msk [vmem:[#allocation2 + $0xb0] sm:$0xf] %vm18_vm0, %v175_v25 }
  0x78   :  { %v173_v27 = vpop.permute.xlu0 %172  ;;  %v132_v28 = vpop.permute.xlu1 %131 }
  0x79   :  { %v177_v29 = vsel %vm176_vm1, %v171_v26, %v173_v27  ;;  %v178_v30 = vsel %vm176_vm1, %v173_v27, %v175_v25  ;;  %vm345_vm1 = vcmask 1006592  }
  0x7a   :  { %182 = vst [vmem:[#allocation2 + $0xa0] sm:$0xf] %v177_v29  ;;  %183 = vst [vmem:[#allocation2 + $0xa8] sm:$0xf] %v178_v30 }
  0x7c   :  { %v134_v31 = vpop.permute.xlu0 %133  ;;  %v153_v32 = vpop.permute.xlu1 %152 }
  0x7d   :  { %v137_v33 = vsel %vm135_vm2, %v132_v28, %v134_v31  ;;  %143 = vst.msk [vmem:[#allocation2 + $0x88] sm:$0xf] %vm18_vm0, %v134_v31 }
  0x7e   :  { %142 = vst [vmem:[#allocation2 + $0x80] sm:$0xf] %v137_v33 }
  0x80   :  { %v155_v34 = vpop.permute.xlu0 %154  ;;  %v130_v35 = vpop.permute.xlu1 %129 }
  0x81   :  { %v158_v36 = vsel %vm156_vm4, %v153_v32, %v155_v34  ;;  %164 = vst.msk [vmem:[#allocation2 + $0x88] sm:$0xf0] %vm40_vm3, %v155_v34  ;;  %v136_v37 = vsel %vm135_vm2, %v130_v35, %v132_v28  ;;  %v396_v38 = vld [vmem:[#allocation2 + $0xa8] sm:$0xf]  ;;  %v395_v39 = vld [vmem:[#allocation2 + $0xa0] sm:$0xf] }
  0x82   :  { %163 = vst [vmem:[#allocation2 + $0x80] sm:$0xf0] %v158_v36  ;;  %141 = vst [vmem:[#allocation2 + $0x78] sm:$0xf] %v136_v37  ;;  %711 = vmatprep.subr.msk.mxu0 %vm404_vm5, %v396_v38  ;;  %vm816_vm2 = vmmov 0  }
  0x83   :  { %712 = vmatpush1.msk.msra.mxu0 %vm404_vm5, %v395_v39 }
  0x84   :  { %v151_v40 = vpop.permute.xlu0 %150  ;;  %v91_v41 = vpop.permute.xlu1 %90 }
  0x85   :  { %v157_v42 = vsel %vm156_vm4, %v151_v40, %v153_v32  ;;  %vm283_vm4 = vcmask 105472  }
  0x86   :  { %162 = vst [vmem:[#allocation2 + $0x78] sm:$0xf0] %v157_v42 }
  0x88   :  { %v93_v43 = vpop.permute.xlu0 %92  ;;  %v112_v44 = vpop.permute.xlu1 %111 }
  0x89   :  { %v96_v45 = vsel %vm94_vm6, %v91_v41, %v93_v43  ;;  %102 = vst.msk [vmem:[#allocation2 + $0x60] sm:$0xf] %vm18_vm0, %v93_v43  ;;  %v391_v46 = vld [vmem:[#allocation2 + $0x80] sm:$0xff] }
  0x8a   :  { %101 = vst [vmem:[#allocation2 + $0x58] sm:$0xf] %v96_v45  ;;  %444 = vmatprep.subr.mxu0 %v391_v46 }
  0x8c   :  { %v114_v47 = vpop.permute.xlu0 %113  ;;  %v89_v48 = vpop.permute.xlu1 %88 }
  0x8d   :  { %v117_v49 = vsel %vm115_vm7, %v112_v44, %v114_v47  ;;  %123 = vst.msk [vmem:[#allocation2 + $0x60] sm:$0xf0] %vm40_vm3, %v114_v47  ;;  %v95_v50 = vsel %vm94_vm6, %v89_v48, %v91_v41  ;;  %v390_v51 = vld [vmem:[#allocation2 + $0x78] sm:$0xff]  ;;  %vm242_vm6 = vcmask 244736  }
  0x8e   :  { %122 = vst [vmem:[#allocation2 + $0x58] sm:$0xf0] %v117_v49  ;;  %100 = vst [vmem:[#allocation2 + $0x50] sm:$0xf] %v95_v50  ;;  %445 = vmatpush1.msra.mxu0 %v390_v51 }
  0x90   :  { %v110_v52 = vpop.permute.xlu0 %109  ;;  %v50_v53 = vpop.permute.xlu1 %49 }
  0x91   :  { %v116_v54 = vsel %vm115_vm7, %v110_v52, %v112_v44  ;;  %vm263_vm7 = vcmask 113664  }
  0x92   :  { %121 = vst [vmem:[#allocation2 + $0x50] sm:$0xf0] %v116_v54 }
  0x94   :  { %v52_v55 = vpop.permute.xlu0 %51  ;;  %v71_v56 = vpop.permute.xlu1 %70 }
  0x95   :  { %v55_v57 = vsel %vm53_vm8, %v50_v53, %v52_v55  ;;  %61 = vst.msk [vmem:[#allocation2 + $0x38] sm:$0xf] %vm18_vm0, %v52_v55  ;;  %v386_v58 = vld [vmem:[#allocation2 + $0x58] sm:$0xff]  ;;  %vm229_vm0 = vcmask 523268  }
  0x96   :  { %60 = vst [vmem:[#allocation2 + $0x30] sm:$0xf] %v55_v57  ;;  %446 = vmatprep.subr.mxu0 %v386_v58 }
  0x98   :  { %v73_v59 = vpop.permute.xlu0 %72  ;;  %v48_v60 = vpop.permute.xlu1 %47 }
  0x99   :  { %v76_v61 = vsel %vm74_vm9, %v71_v56, %v73_v59  ;;  %82 = vst.msk [vmem:[#allocation2 + $0x38] sm:$0xf0] %vm40_vm3, %v73_v59  ;;  %v54_v62 = vsel %vm53_vm8, %v48_v60, %v50_v53  ;;  %v385_v63 = vld [vmem:[#allocation2 + $0x50] sm:$0xff]  ;;  %vm197_vm8 = vcmask 261120  }
  0x9a   :  { %81 = vst [vmem:[#allocation2 + $0x30] sm:$0xf0] %v76_v61  ;;  %59 = vst [vmem:[#allocation2 + $0x28] sm:$0xf] %v54_v62  ;;  %447 = vmatpush1.msra.mxu0 %v385_v63 }
  0x9c   :  { %v69_v0 = vpop.permute.xlu0 %68  ;;  %v29_v1 = vpop.permute.xlu1 %28 }
  0x9d   :  { %v75_v2 = vsel %vm74_vm9, %v69_v0, %v71_v56  ;;  %vm220_vm9 = vcmask 252928  }
  0x9e   :  { %80 = vst [vmem:[#allocation2 + $0x28] sm:$0xf0] %v75_v2 }
  0xa0   :  { %v31_v3 = vpop.permute.xlu0 %30  ;;  %v362_v4 = vpop.permute.xlu1 %361 }
  0xa1   :  { %v34_v5 = vsel %vm32_vm10, %v29_v1, %v31_v3  ;;  %41 = vst.msk [vmem:[#allocation2 + $0x10] sm:$0xf0] %vm40_vm3, %v31_v3  ;;  %v381_v6 = vld [vmem:[#allocation2 + $0x30] sm:$0xff]  ;;  %vm226_vm3 = vcmask 1047812  }
  0xa2   :  { %39 = vst [vmem:[#allocation2 + $0x8] sm:$0xf0] %v34_v5  ;;  %448 = vmatprep.subr.mxu0 %v381_v6 }
  0xa4   :  { %v364_v7 = vpop.permute.xlu0 %363  ;;  %v27_v8 = vpop.permute.xlu1 %26 }
  0xa5   :  { %v367_v9 = vsel %vm365_vm12, %v362_v4, %v364_v7  ;;  %373 = vst.msk [vmem:[#allocation2 + $0xc0] sm:$0xf] %vm206_vm11, %v364_v7  ;;  %v33_v10 = vsel %vm32_vm10, %v27_v8, %v29_v1  ;;  %v380_v11 = vld [vmem:[#allocation2 + $0x28] sm:$0xff]  ;;  %vm679_vm10 = vcmask 785408  }
  0xa6   :  { %372 = vst [vmem:[#allocation2 + $0xb8] sm:$0xf] %v367_v9  ;;  %38 = vst [vmem:[#allocation2] sm:$0xf0] %v33_v10  ;;  %449 = vmatpush1.msra.mxu0 %v380_v11 }
  0xa8   :  { %v360_v12 = vpop.permute.xlu0 %359  ;;  %v321_v13 = vpop.permute.xlu1 %320 }
  0xa9   :  { %v366_v15 = vsel %vm365_vm12, %v360_v12, %v362_v4  ;;  %v376_v16 = vld [vmem:[#allocation2 + $0x8] sm:$0xff] }
  0xaa   :  { %371 = vst.msk [vmem:[#allocation2 + $0xb0] sm:$0xf] %vm203_vm13, %v366_v15  ;;  %450 = vmatprep.subr.mxu0 %v376_v16 }
  0xac   :  { %v323_v17 = vpop.permute.xlu0 %322  ;;  %v342_v18 = vpop.permute.xlu1 %341  ;;  %v399_v23 = vld [vmem:[#allocation2 + $0xc0] sm:$0xf] }
  0xad   :  { %v326_v20 = vsel %vm324_vm14, %v321_v13, %v323_v17  ;;  %332 = vst.msk [vmem:[#allocation2 + $0x98] sm:$0xf] %vm206_vm11, %v323_v17  ;;  %v375_v21 = vld [vmem:[#allocation2] sm:$0xff]  ;;  %v398_v22 = vld [vmem:[#allocation2 + $0xb8] sm:$0xf] }
  0xae   :  { %331 = vst [vmem:[#allocation2 + $0x90] sm:$0xf] %v326_v20  ;;  %451 = vmatpush1.msra.mxu0 %v375_v21  ;;  %714 = vmatprep.subr.msk.mxu1 %vm404_vm5, %v398_v22 }
  0xaf   :  { %733 = vmatprep.subr.mxu0 %v807_v14  ;;  %713 = vmatmul.mubr.msk.f32.vlgmr.msra.gmra.mxu0 %vm400_vm15, %v911_v19 }
  0xb0   :  { %v344_v24 = vpop.permute.xlu0 %343  ;;  %v319_v25 = vpop.permute.xlu1 %318  ;;  %734 = vmatpush3.msk.msra.mxu0 %vm404_vm5, %v399_v23  ;;  %743 = vmatprep.mubr.msk.f32.mxu0 %vm816_vm2, %v807_v14 }
  0xb1   :  { %v347_v26 = vsel %vm345_vm1, %v342_v18, %v344_v24  ;;  %353 = vst.msk [vmem:[#allocation2 + $0x98] sm:$0xf0] %vm229_vm0, %v344_v24  ;;  %v325_v27 = vsel %vm324_vm14, %v319_v25, %v321_v13  ;;  %v397_v28 = vld [vmem:[#allocation2 + $0xb0] sm:$0xf]  ;;  %735 = vmatprep.subr.mxu0 %v807_v14 }
  0xb2   :  { %352 = vst [vmem:[#allocation2 + $0x90] sm:$0xf0] %v347_v26  ;;  %330 = vst.msk [vmem:[#allocation2 + $0x88] sm:$0xf] %vm203_vm13, %v325_v27  ;;  %715 = vmatpush1.msk.msra.mxu1 %vm404_vm5, %v397_v28  ;;  %vm304_vm5 = vcmask 97280  }
  0xb4   :  { %v340_v29 = vpop.permute.xlu0 %339  ;;  %v278_v30 = vpop.permute.xlu1 %277 }
  0xb5   :  { %v346_v31 = vsel %vm345_vm1, %v340_v29, %v342_v18  ;;  %289 = vst.msk [vmem:[#allocation2 + $0x60] sm:$0xf] %vm203_vm13, %v278_v30 }
  0xb6   :  { %351 = vst.msk [vmem:[#allocation2 + $0x88] sm:$0xf0] %vm226_vm3, %v346_v31 }
  0xb8   :  { %v280_v32 = vpop.permute.xlu0 %279  ;;  %v299_v33 = vpop.permute.xlu1 %298  ;;  %v394_v34 = vld [vmem:[#allocation2 + $0x98] sm:$0xff] }
  0xb9   :  { %v284_v35 = vsel %vm283_vm4, %v278_v30, %v280_v32  ;;  %310 = vst.msk [vmem:[#allocation2 + $0x60] sm:$0xf0] %vm226_vm3, %v299_v33  ;;  %736 = vmatpush3.msra.mxu0 %v394_v34  ;;  %v393_v36 = vld [vmem:[#allocation2 + $0x90] sm:$0xff] }
  0xba   :  { %290 = vst [vmem:[#allocation2 + $0x68] sm:$0xf] %v284_v35  ;;  %515 = vmatprep.subr.mxu1 %v393_v36  ;;  %737 = vmatprep.subr.mxu0 %v807_v14 }
  0xbc   :  { %v301_v37 = vpop.permute.xlu0 %300  ;;  %v237_v38 = vpop.permute.xlu1 %236 }
  0xbd   :  { %v305_v39 = vsel %vm304_vm5, %v299_v33, %v301_v37  ;;  %248 = vst.msk [vmem:[#allocation2 + $0x38] sm:$0xf] %vm203_vm13, %v237_v38  ;;  %v392_v40 = vld [vmem:[#allocation2 + $0x88] sm:$0xff] }
  0xbe   :  { %311 = vst [vmem:[#allocation2 + $0x68] sm:$0xf0] %v305_v39  ;;  %516 = vmatpush1.msra.mxu1 %v392_v40 }
  0xc0   :  { %v239_v41 = vpop.permute.xlu0 %238  ;;  %v258_v42 = vpop.permute.xlu1 %257  ;;  %v387_v49 = vld [vmem:[#allocation2 + $0x60] sm:$0xff] }
  0xc1   :  { %v243_v43 = vsel %vm242_vm6, %v237_v38, %v239_v41  ;;  %269 = vst.msk [vmem:[#allocation2 + $0x38] sm:$0xf0] %vm226_vm3, %v258_v42 }
  0xc2   :  { %249 = vst [vmem:[#allocation2 + $0x40] sm:$0xf] %v243_v43 }
  0xc4   :  { %v260_v44 = vpop.permute.xlu0 %259  ;;  %v282_v45 = vpop.permute.xlu1 %281 }
  0xc5   :  { %v264_v46 = vsel %vm263_vm7, %v258_v42, %v260_v44  ;;  %v285_v47 = vsel %vm283_vm4, %v280_v32, %v282_v45  ;;  %v388_v48 = vld [vmem:[#allocation2 + $0x68] sm:$0xff] }
  0xc6   :  { %270 = vst [vmem:[#allocation2 + $0x40] sm:$0xf0] %v264_v46  ;;  %291 = vst.msk [vmem:[#allocation2 + $0x70] sm:$0xf] %vm206_vm11, %v285_v47  ;;  %517 = vmatprep.subr.mxu1 %v388_v48 }
  0xc7   :  { %518 = vmatpush1.msra.mxu1 %v387_v49 }
  0xc8   :  { %v303_v50 = vpop.permute.xlu0 %302  ;;  %v192_v51 = vpop.permute.xlu1 %191  ;;  %v382_v57 = vld [vmem:[#allocation2 + $0x38] sm:$0xff] }
  0xc9   :  { %v306_v52 = vsel %vm304_vm5, %v301_v37, %v303_v50  ;;  %204 = vst.msk [vmem:[#allocation2 + $0x10] sm:$0xf] %vm203_vm13, %v192_v51 }
  0xca   :  { %312 = vst.msk [vmem:[#allocation2 + $0x70] sm:$0xf0] %vm229_vm0, %v306_v52 }
  0xcc   :  { %v194_v53 = vpop.permute.xlu0 %193  ;;  %v215_v54 = vpop.permute.xlu1 %214 }
  0xcd   :  { %v198_v55 = vsel %vm197_vm8, %v192_v51, %v194_v53  ;;  %227 = vst.msk [vmem:[#allocation2 + $0x10] sm:$0xf0] %vm226_vm3, %v215_v54  ;;  %v383_v56 = vld [vmem:[#allocation2 + $0x40] sm:$0xff] }
  0xce   :  { %205 = vst [vmem:[#allocation2 + $0x18] sm:$0xf] %v198_v55  ;;  %519 = vmatprep.subr.mxu1 %v383_v56 }
  0xcf   :  { %520 = vmatpush1.msra.mxu1 %v382_v57 }
  0xd0   :  { %v217_v58 = vpop.permute.xlu0 %216  ;;  %v241_v59 = vpop.permute.xlu1 %240 }
  0xd1   :  { %v221_v60 = vsel %vm220_vm9, %v215_v54, %v217_v58  ;;  %v244_v61 = vsel %vm242_vm6, %v239_v41, %v241_v59  ;;  %v389_v62 = vld [vmem:[#allocation2 + $0x70] sm:$0xff] }
  0xd2   :  { %228 = vst [vmem:[#allocation2 + $0x18] sm:$0xf0] %v221_v60  ;;  %250 = vst.msk [vmem:[#allocation2 + $0x48] sm:$0xf] %vm206_vm11, %v244_v61  ;;  %738 = vmatpush3.msra.mxu0 %v389_v62 }
  0xd3   :  { %739 = vmatprep.subr.mxu0 %v807_v14 }
  0xd4   :  { %v262_v63 = vpop.permute.xlu0 %261  ;;  %v196_v0 = vpop.permute.xlu1 %195  ;;  %v377_v6 = vld [vmem:[#allocation2 + $0x10] sm:$0xff] }
  0xd5   :  { %v265_v1 = vsel %vm263_vm7, %v260_v44, %v262_v63  ;;  %v199_v2 = vsel %vm197_vm8, %v194_v53, %v196_v0 }
  0xd6   :  { %271 = vst.msk [vmem:[#allocation2 + $0x48] sm:$0xf0] %vm229_vm0, %v265_v1 }
  0xd7   :  { %207 = vst.msk [vmem:[#allocation2 + $0x20] sm:$0xf] %vm206_vm11, %v199_v2 }
  0xd8   :  { %v219_v3 = vpop.permute.xlu0 %218 }
  0xd9   :  { %v222_v4 = vsel %vm220_vm9, %v217_v58, %v219_v3  ;;  %v378_v5 = vld [vmem:[#allocation2 + $0x18] sm:$0xff] }
  0xda   :  { %230 = vst.msk [vmem:[#allocation2 + $0x20] sm:$0xf0] %vm229_vm0, %v222_v4  ;;  %521 = vmatprep.subr.mxu1 %v378_v5 }
  0xdb   :  { %522 = vmatpush1.msra.mxu1 %v377_v6 }
  0xdc   :  { %716 = vmatmul.mubr.msk.f32.vlgmr.msra.gmra.mxu1 %vm400_vm15, %v911_v19 }
  0xdd   :  { %v384_v7 = vld [vmem:[#allocation2 + $0x48] sm:$0xff] }
  0xde   :  { %740 = vmatpush3.msra.mxu0 %v384_v7 }
  0xdf   :  { %741 = vmatprep.subr.mxu0 %v807_v14 }
  0xe1   :  { %v379_v8 = vld [vmem:[#allocation2 + $0x20] sm:$0xff] }
  0xe2   :  { %742 = vmatpush3.msra.mxu0 %v379_v8 }
  0xe3   :  { %744 = vmatmul.mubr.msk.f32.vlgmr.msra.gmra.mxu0 %vm400_vm15, %v911_v19 }
 0x16f   :  { %v486_v9 = vpop.f32.mrf.mxu0 }
 0x170   :  { %v719_v10 = vmul.f32 -1.442695, %v486_v9 }
 0x171   :  { %v488_v11 = vpop.f32.mrf.mxu0 }
 0x172   :  { %778 = vpow2.f32 %v719_v10  ;;  %v720_v12 = vmul.f32 -1.442695, %v488_v11 }
 0x174   :  { %780 = vpow2.f32 %v720_v12 }
 0x17f   :  { %v779_v13 = vpop.eup %778 }
 0x180   :  { %v647_v15 = vadd.f32 1.0, %v779_v13 }
 0x181   :  { %v781_v16 = vpop.eup %780 }
 0x182   :  { %782 = vrcp.f32 %v647_v15  ;;  %v648_v17 = vadd.f32 1.0, %v781_v16 }
 0x184   :  { %784 = vrcp.f32 %v648_v17 }
 0x18f   :  { %v783_v18 = vpop.eup %782 }
 0x190   :  { %v662_v20 = vmul.f32 %v783_v18, %v486_v9 }
 0x191   :  { %v785_v14 = vpop.eup %784 }
 0x192   :  { %667 = vst [vmem:[%s982_s2] sm:$0xff] %v662_v20  ;;  %v663_v19 = vmul.f32 %v785_v14, %v488_v11 }
 0x194   :  { %668 = vst [vmem:[%s982_s2 + $0x8] sm:$0xff] %v663_v19 }
 0x19c   :  { %v557_v21 = vpop.f32.mrf.mxu1 }
 0x19d   :  { %v721_v22 = vmul.f32 -1.442695, %v557_v21 }
 0x19e   :  { %v559_v23 = vpop.f32.mrf.mxu1 }
 0x19f   :  { %786 = vpow2.f32 %v721_v22  ;;  %v722_v24 = vmul.f32 -1.442695, %v559_v23 }
 0x1a1   :  { %788 = vpow2.f32 %v722_v24 }
 0x1a3   :  { %v628_v25 = vpop.f32.mrf.mxu0 }
 0x1a4   :  { %v723_v26 = vmul.f32 -1.442695, %v628_v25 }
 0x1a5   :  { %v745_v27 = vpop.f32.mrf.mxu0 }
 0x1a6   :  { %790 = vpow2.f32 %v723_v26 }
 0x1ac   :  { %v787_v28 = vpop.eup %786 }
 0x1ad   :  { %v649_v29 = vadd.f32 1.0, %v787_v28 }
 0x1ae   :  { %v789_v30 = vpop.eup %788 }
 0x1af   :  { %792 = vrcp.f32 %v649_v29  ;;  %v650_v31 = vadd.f32 1.0, %v789_v30 }
 0x1b1   :  { %794 = vrcp.f32 %v650_v31 }
 0x1b3   :  { %v791_v32 = vpop.eup %790 }
 0x1b4   :  { %v651_v33 = vadd.f32 1.0, %v791_v32 }
 0x1b6   :  { %796 = vrcp.f32 %v651_v33 }
 0x1bc   :  { %v793_v34 = vpop.eup %792 }
 0x1bd   :  { %v664_v35 = vmul.f32 %v793_v34, %v557_v21 }
 0x1be   :  { %v795_v36 = vpop.eup %794 }
 0x1bf   :  { %669 = vst.msk [vmem:[%s982_s2 + $0x10] sm:$0xff] %vm197_vm8, %v664_v35  ;;  %v665_v37 = vmul.f32 %v795_v36, %v559_v23  ;;  %673 = vrot.lane.b32.xlu1 %v664_v35, %s817_s16 }
 0x1c1   :  { %675 = vrot.lane.b32.xlu0 %v665_v37, %s817_s16 }
 0x1c3   :  { %v797_v38 = vpop.eup %796 }
 0x1c4   :  { %v666_v39 = vmul.f32 %v797_v38, %v628_v25 }
 0x1c6   :  { %677 = vrot.lane.b32.xlu1 %v666_v39, %s817_s16 }
 0x231   :  { %v674_v40 = vpop.permute.xlu1 %673 }
 0x233   :  { %v676_v41 = vpop.permute.xlu0 %675 }
 0x234   :  { %v680_v42 = vsel %vm679_vm10, %v674_v40, %v676_v41 }
 0x235   :  { %724 = vst [vmem:[%s982_s2 + $0x18] sm:$0xff] %v680_v42 }
 0x238   :  { %v678_v43 = vpop.permute.xlu1 %677 }
 0x239   :  { %v681_v44 = vsel %vm679_vm10, %v676_v41, %v678_v43  ;;  %726 = vst.msk [vmem:[%s982_s2 + $0x28] sm:$0xff] %vm197_vm8, %v678_v43 }
 0x23a   :  { %725 = vst [vmem:[%s982_s2 + $0x20] sm:$0xff] %v681_v44 }

</bundles_post_ra>
